<compile_context>
chip_gen: v5e
topology: v5e:2x2
jax: 0.10.0
libtpu: 0.0.40
codegen_flags: <defaults>
</compile_context>

<pallas_src>
import jax
import jax.numpy as jnp
from jax.experimental import pallas as pl
from jax.experimental.pallas import tpu as pltpu


# --------------------------------------------------------------------------------------
# Kernel 1: GRU cell + tanh(cat-linear).  No grid: whole-array VMEM blocks, run once.
# --------------------------------------------------------------------------------------
def gru_cat_kernel(x_ref, h_ref, ctx_ref,
                   w_ih_ref, w_hh_ref, b_fold_ref, b_hn_ref,
                   w_cat_src_ref, w_cat_h_ref, b_cat_ref,
                   h_out_ref, tilde_ref):
    """x:(B,E) f32, h/ctx:(B,H) f32; weights pre-transposed bf16 (PyTorch gate order r,z,n).
    b_fold = [b_ih_r+b_hh_r, b_ih_z+b_hh_z, b_ih_n]; b_hn kept separate (inside r-gate).
    Outputs: h_out (B,H) f32, tilde (B,H) bf16."""
    H = h_ref.shape[-1]
    x = x_ref[...].astype(jnp.bfloat16)
    h = h_ref[...]                                       # stay f32 for the gate blend

    gx = jnp.dot(x, w_ih_ref[...], preferred_element_type=jnp.float32) + b_fold_ref[...]
    gh = jnp.dot(h.astype(jnp.bfloat16), w_hh_ref[...], preferred_element_type=jnp.float32)
    r = jax.nn.sigmoid(gx[:, 0:H] + gh[:, 0:H])
    z = jax.nn.sigmoid(gx[:, H:2 * H] + gh[:, H:2 * H])
    n = jnp.tanh(gx[:, 2 * H:3 * H] + r * (gh[:, 2 * H:3 * H] + b_hn_ref[...]))
    h_new = (1.0 - z) * n + z * h
    h_out_ref[...] = h_new

    # tanh( cat((ctx, h_new)) @ W_cat^T + b_cat ) via split weights (no concat needed)
    lin = (jnp.dot(ctx_ref[...].astype(jnp.bfloat16), w_cat_src_ref[...],
                   preferred_element_type=jnp.float32)
           + jnp.dot(h_new.astype(jnp.bfloat16), w_cat_h_ref[...],
                     preferred_element_type=jnp.float32)
           + b_cat_ref[...])
    tilde_ref[...] = jnp.tanh(lin).astype(jnp.bfloat16)


# --------------------------------------------------------------------------------------
# Kernel 2: streamed int8 vocab projection.  grid = (n_tiles,), tiles are independent.
# --------------------------------------------------------------------------------------
def predict_kernel(tilde_ref, w_q_ref, scale_ref, b_ref, pred_ref):
    """tilde:(B,H) bf16 resident; w_q:(H,TILE_V) int8; scale,b:(1,TILE_V) f32.
    int8 -> bf16 cast is exact; per-column scale applied to the f32 accumulator."""
    acc = jnp.dot(tilde_ref[...], w_q_ref[...].astype(jnp.bfloat16),
                  preferred_element_type=jnp.float32)
    pred_ref[...] = acc * scale_ref[...] + b_ref[...]


# --------------------------------------------------------------------------------------
# Sizing helpers (generation-aware)
# --------------------------------------------------------------------------------------
def _vmem_capacity_bytes():
    try:
        cap = int(pltpu.get_tpu_info().vmem_capacity_bytes)
        if cap > 0:
            return cap
    except Exception:
        pass
    return 64 * 1024 * 1024        # conservative fallback = v7x per-TensorCore VMEM


def _auto_tile_v(H, V, batch_hint=16):
    """Largest lane-aligned vocab tile whose double-buffered int8 stream (+scale/bias/output
    tiles) fits comfortably in this generation's VMEM; whole padded vocab if it is small."""
    cap = _vmem_capacity_bytes()
    budget = min(cap // 3, 40 * 1024 * 1024)
    per_col = 2 * (H * 1 + 2 * 4) + 2 * 4 * batch_hint   # 2 bufs: int8 col + scale/bias; out
    tile_v = max(128, (budget // per_col) // 128 * 128)
    tile_v = min(tile_v, 16384)
    v_ceil = pl.cdiv(V, 128) * 128
    return int(min(tile_v, v_ceil))


def _gru_vmem_bytes(B, E, H):
    bf16, f32 = 2, 4
    weights = bf16 * (E * 3 * H + H * 3 * H + 2 * H * H)
    biases = f32 * (3 * H + 2 * H)
    io = f32 * (B * E + 3 * B * H) + bf16 * B * H
    return weights + biases + io


def _proj_vmem_bytes(B, H, tile_v):
    resident = 2 * B * H                                  # tilde (bf16), single buffer
    streamed = 2 * (H * tile_v * 1 + 2 * 4 * tile_v)      # double-buffered w_q + scale + bias
    out = 2 * 4 * B * tile_v                              # double-buffered output tile
    return resident + streamed + out + (2 << 20)          # + Mosaic internal scratch headroom


# --------------------------------------------------------------------------------------
# One-time weight preparation (hoisted out of the per-step call)
# --------------------------------------------------------------------------------------
def prepare_params(raw, tile_v=None):
    """Transpose, split gates, fold biases, bf16-cast the small weights, int8-quantize the
    vocab projection (per-column scales), and pre-tile it into (n_tiles, H, TILE_V)."""
    H = raw["w_hh"].shape[1]
    E = raw["w_ih"].shape[1]
    V = raw["w_pred"].shape[0]
    assert H % 128 == 0, "hidden_dim must be a multiple of 128 (lane-aligned gate slices)"

    if tile_v is None:
        tile_v = _auto_tile_v(H, V)
    assert tile_v % 128 == 0, "tile_v must be a multiple of 128 (lane-dense stores)"

    v_pad = pl.cdiv(V, tile_v) * tile_v
    n_tiles = v_pad // tile_v

    # ---- int8 quantization of w_pred (per-output-column scales), padded + pre-tiled ----
    w_pred_T = jnp.pad(raw["w_pred"].T.astype(jnp.float32), ((0, 0), (0, v_pad - V)))
    amax = jnp.max(jnp.abs(w_pred_T), axis=0, keepdims=True)              # (1, V_pad)
    scale = jnp.where(amax > 0, amax / 127.0, 1.0).astype(jnp.float32)
    w_q = jnp.clip(jnp.round(w_pred_T / scale), -127, 127).astype(jnp.int8)
    w_q_tiled = w_q.reshape(H, n_tiles, tile_v).transpose(1, 0, 2)        # (n_tiles,H,TILE_V)
    scale_tiled = scale.reshape(1, n_tiles, tile_v).transpose(1, 0, 2)    # (n_tiles,1,TILE_V)
    b_pred = jnp.zeros((v_pad,), jnp.float32).at[:V].set(raw["b_pred"])
    b_pred_tiled = b_pred.reshape(1, n_tiles, tile_v).transpose(1, 0, 2)  # (n_tiles,1,TILE_V)

    b_ih, b_hh = raw["b_ih"], raw["b_hh"]
    return {
        "embedding": raw["embedding"],
        "w_ih_T": raw["w_ih"].T.astype(jnp.bfloat16),                 # (E, 3H)
        "w_hh_T": raw["w_hh"].T.astype(jnp.bfloat16),                 # (H, 3H)
        "b_fold": jnp.concatenate([b_ih[:2 * H] + b_hh[:2 * H], b_ih[2 * H:]])[None, :],
        "b_hn": b_hh[2 * H:][None, :],
        "w_cat_src_T": raw["w_cat"][:, :H].T.astype(jnp.bfloat16),    # (H, H)
        "w_cat_h_T": raw["w_cat"][:, H:].T.astype(jnp.bfloat16),      # (H, H)
        "b_cat": raw["b_cat"][None, :],
        "w_pred_q": w_q_tiled,                                        # int8, contiguous tiles
        "w_pred_scale": scale_tiled,                                  # f32 per-column scales
        "b_pred": b_pred_tiled,                                       # f32
        "E": E, "H": H, "V": V, "V_pad": v_pad, "tile_v": tile_v, "n_tiles": n_tiles,
    }


# --------------------------------------------------------------------------------------
# Forward wrapper (one decoder timestep, PyTorch-style shapes)
# --------------------------------------------------------------------------------------
def decoder_forward(kp, input_tensor, source_context, h):
    """input_tensor:(1,B) int32, source_context:(1,B,H), h:(1,B,H)
    returns (prediction (1,B,V), h_new (1,B,H))."""
    B = input_tensor.shape[1]
    E, H, V = kp["E"], kp["H"], kp["V"]
    V_pad, tile_v, n_tiles = kp["V_pad"], kp["tile_v"], kp["n_tiles"]
    cap = _vmem_capacity_bytes()

    # Embedding lookup (data-dependent gather) stays in plain-JAX glue.
    x_emb = jnp.take(kp["embedding"], input_tensor[0], axis=0)            # (B, E)
    h2, ctx2 = h[0], source_context[0]

    # ---- call 1: GRU cell + tanh(cat-linear); no grid => weights single-buffered ----
    gru_limit = int(min(cap * 3 // 4, max(32 << 20, 2 * _gru_vmem_bytes(B, E, H) + (2 << 20))))
    h_new, tilde = pl.pallas_call(
        gru_cat_kernel,
        out_shape=(jax.ShapeDtypeStruct((B, H), jnp.float32),
                   jax.ShapeDtypeStruct((B, H), jnp.bfloat16)),
        compiler_params=pltpu.CompilerParams(vmem_limit_bytes=gru_limit),
    )(x_emb, h2, ctx2,
      kp["w_ih_T"], kp["w_hh_T"], kp["b_fold"], kp["b_hn"],
      kp["w_cat_src_T"], kp["w_cat_h_T"], kp["b_cat"])

    # ---- call 2: streamed int8 vocab projection; independent tiles => "parallel" ----
    proj_limit = int(min(cap * 3 // 4,
                         max(32 << 20, _proj_vmem_bytes(B, H, tile_v) * 5 // 4)))
    pred_full = pl.pallas_call(
        predict_kernel,
        out_shape=jax.ShapeDtypeStruct((B, V_pad), jnp.float32),
        grid_spec=pltpu.PrefetchScalarGridSpec(
            num_scalar_prefetch=0,
            grid=(n_tiles,),
            in_specs=[
                pl.BlockSpec((B, H), lambda j: (0, 0)),                   # tilde, resident
                pl.BlockSpec((None, H, tile_v), lambda j: (j, 0, 0)),     # contiguous w_q tile
                pl.BlockSpec((None, 1, tile_v), lambda j: (j, 0, 0)),     # per-column scales
                pl.BlockSpec((None, 1, tile_v), lambda j: (j, 0, 0)),     # bias tile
            ],
            out_specs=pl.BlockSpec((B, tile_v), lambda j: (0, j)),
        ),
        compiler_params=pltpu.CompilerParams(
            dimension_semantics=("parallel",),        # tiles independent => v7x megacore OK
            vmem_limit_bytes=proj_limit,
        ),
    )(tilde, kp["w_pred_q"], kp["w_pred_scale"], kp["b_pred"])

    # NOTE: padded vocab columns hold logit 0 (not -inf); always slice before softmax/argmax.
    return pred_full[:, :V][None], h_new[None]


# --------------------------------------------------------------------------------------
# References
# --------------------------------------------------------------------------------------
def decoder_reference_mixed(kp, input_tensor, source_context, h):
    """Pure-JAX reference with the kernel's exact precision (bf16 weights, int8 w_pred,
    f32 accumulation, scale applied after the dot)."""
    H, V, V_pad = kp["H"], kp["V"], kp["V_pad"]
    x = jnp.take(kp["embedding"], input_tensor[0], axis=0)
    hp, ctx = h[0], source_context[0]
    gx = jnp.dot(x.astype(jnp.bfloat16), kp["w_ih_T"],
                 preferred_element_type=jnp.float32) + kp["b_fold"]
    gh = jnp.dot(hp.astype(jnp.bfloat16), kp["w_hh_T"], preferred_element_type=jnp.float32)
    r = jax.nn.sigmoid(gx[:, :H] + gh[:, :H])
    z = jax.nn.sigmoid(gx[:, H:2 * H] + gh[:, H:2 * H])
    n = jnp.tanh(gx[:, 2 * H:] + r * (gh[:, 2 * H:] + kp["b_hn"]))
    h_new = (1.0 - z) * n + z * hp
    lin = (jnp.dot(ctx.astype(jnp.bfloat16), kp["w_cat_src_T"],
                   preferred_element_type=jnp.float32)
           + jnp.dot(h_new.astype(jnp.bfloat16), kp["w_cat_h_T"],
                     preferred_element_type=jnp.float32)
           + kp["b_cat"])
    tilde = jnp.tanh(lin).astype(jnp.bfloat16)
    w_q = jnp.transpose(kp["w_pred_q"], (1, 0, 2)).reshape(H, V_pad).astype(jnp.bfloat16)
    scale = jnp.transpose(kp["w_pred_scale"], (1, 0, 2)).reshape(1, V_pad)
    bias = jnp.transpose(kp["b_pred"], (1, 0, 2)).reshape(1, V_pad)
    pred = jnp.dot(tilde, w_q, preferred_element_type=jnp.float32) * scale + bias
    return pred[:, :V][None], h_new[None]


def decoder_reference_f32(raw, input_tensor, source_context, h):
    """Pure-f32 reference reproducing the PyTorch forward exactly."""
    x = jnp.take(raw["embedding"], input_tensor[0], axis=0)
    hp = h[0]
    H = hp.shape[-1]
    gx = x @ raw["w_ih"].T + raw["b_ih"]
    gh = hp @ raw["w_hh"].T + raw["b_hh"]
    r = jax.nn.sigmoid(gx[:, :H] + gh[:, :H])
    z = jax.nn.sigmoid(gx[:, H:2 * H] + gh[:, H:2 * H])
    n = jnp.tanh(gx[:, 2 * H:] + r * gh[:, 2 * H:])
    h_new = (1.0 - z) * n + z * hp
    cat = jnp.concatenate([source_context[0], h_new], axis=-1)
    tilde = jnp.tanh(cat @ raw["w_cat"].T + raw["b_cat"])
    pred = tilde @ raw["w_pred"].T + raw["b_pred"]
    return pred[None], h_new[None]


def init_params(key, vocab_size, embedding_dim, hidden_dim, padding_idx):
    ks = jax.random.split(key, 9)
    s = 1.0 / jnp.sqrt(hidden_dim)
    emb = jax.random.normal(ks[0], (vocab_size, embedding_dim), jnp.float32)
    emb = emb.at[padding_idx].set(0.0)           # nn.Embedding padding_idx row is zero
    u = lambda k, shape: jax.random.uniform(k, shape, jnp.float32, -s, s)
    return {
        "embedding": emb,
        # nn.GRU(embedding_dim, hidden_dim): weight_ih (3H,E), weight_hh (3H,H)
        "w_ih": u(ks[1], (3 * hidden_dim, embedding_dim)),
        "w_hh": u(ks[2], (3 * hidden_dim, hidden_dim)),
        "b_ih": u(ks[3], (3 * hidden_dim,)),
        "b_hh": u(ks[4], (3 * hidden_dim,)),
        # nn.Linear(2H, H)
        "w_cat": u(ks[5], (hidden_dim, 2 * hidden_dim)),
        "b_cat": u(ks[6], (hidden_dim,)),
        # nn.Linear(H, V)
        "w_pred": u(ks[7], (vocab_size, hidden_dim)),
        "b_pred": u(ks[8], (vocab_size,)),
    }


if __name__ == "__main__":
    VOCAB, EMB, HID, PAD = 1000, 64, 128, 0       # V=1000 exercises vocab padding
    B = 8

    key = jax.random.PRNGKey(0)
    kinit, k1, k2, k3 = jax.random.split(key, 4)
    raw = init_params(kinit, VOCAB, EMB, HID, PAD)

    input_tensor = jax.random.randint(k1, (1, B), 0, VOCAB, dtype=jnp.int32)
    input_tensor = input_tensor.at[0, 0].set(PAD)          # exercise padding_idx row
    source_context = jax.random.normal(k2, (1, B, HID), jnp.float32)
    h0 = jax.random.normal(k3, (1, B, HID), jnp.float32)

    pred_f32, h_f32 = decoder_reference_f32(raw, input_tensor, source_context, h0)

    # Config A: auto tile -> whole (padded) vocab in ONE grid step (small-vocab fast path).
    # Config B: forced 256-wide tiles -> exercises the multi-tile streamed + padded path.
    for tv in (None, 256):
        prep = prepare_params(raw, tile_v=tv)              # one-time hoisted weight prep
        pred, h_new = decoder_forward(prep, input_tensor, source_context, h0)
        jax.block_until_ready((pred, h_new))

        pred_mx, h_mx = decoder_reference_mixed(prep, input_tensor, source_context, h0)
        assert pred.shape == (1, B, VOCAB) and h_new.shape == (1, B, HID)
        # same-precision (bf16 + int8-w_pred) reference: tight agreement
        assert jnp.allclose(pred, pred_mx, atol=2e-2, rtol=2e-2)
        assert jnp.allclose(h_new, h_mx, atol=2e-2, rtol=2e-2)
        # original f32 module semantics: loose fidelity check (deliberate bf16/int8 quant)
        assert jnp.allclose(pred, pred_f32, atol=1e-1, rtol=1e-1)
        assert jnp.allclose(h_new, h_f32, atol=8e-2, rtol=8e-2)

    print("KERNEL_OK")
</pallas_src>

<mosaic_0001>
module attributes {stable_mosaic.version = 11 : i64} {
  func.func @gru_cat_kernel(%arg0: memref<8x64xf32, #tpu.memory_space<vmem>>, %arg1: memref<8x128xf32, #tpu.memory_space<vmem>>, %arg2: memref<8x128xf32, #tpu.memory_space<vmem>>, %arg3: memref<64x384xbf16, #tpu.memory_space<vmem>>, %arg4: memref<128x384xbf16, #tpu.memory_space<vmem>>, %arg5: memref<1x384xf32, #tpu.memory_space<vmem>>, %arg6: memref<1x128xf32, #tpu.memory_space<vmem>>, %arg7: memref<128x128xbf16, #tpu.memory_space<vmem>>, %arg8: memref<128x128xbf16, #tpu.memory_space<vmem>>, %arg9: memref<1x128xf32, #tpu.memory_space<vmem>>, %arg10: memref<8x128xf32, #tpu.memory_space<vmem>>, %arg11: memref<8x128xbf16, #tpu.memory_space<vmem>>) attributes {dimension_semantics = [], scalar_prefetch = 0 : i64, scratch_operands = 0 : i64, tpu.core_type = #tpu.core_type<tc>} {
    %c0 = arith.constant 0 : index
    %c0_0 = arith.constant 0 : index
    %0 = vector.load %arg0[%c0, %c0_0] : memref<8x64xf32, #tpu.memory_space<vmem>>, vector<8x64xf32>
    %1 = arith.truncf %0 : vector<8x64xf32> to vector<8x64xbf16>
    %c0_1 = arith.constant 0 : index
    %c0_2 = arith.constant 0 : index
    %2 = vector.load %arg1[%c0_1, %c0_2] : memref<8x128xf32, #tpu.memory_space<vmem>>, vector<8x128xf32>
    %c0_3 = arith.constant 0 : index
    %c0_4 = arith.constant 0 : index
    %3 = vector.load %arg3[%c0_3, %c0_4] : memref<64x384xbf16, #tpu.memory_space<vmem>>, vector<64x384xbf16>
    %cst = arith.constant dense<0.000000e+00> : vector<8x384xf32>
    %4 = tpu.matmul %1, %3, %cst {dimension_numbers = #tpu.dot_dimension_numbers<[1], [0], [0], [1], [0, 0, 1, 1], [], []>} : vector<8x64xbf16>, vector<64x384xbf16>, vector<8x384xf32> -> vector<8x384xf32>
    %c0_5 = arith.constant 0 : index
    %c0_6 = arith.constant 0 : index
    %5 = vector.load %arg5[%c0_5, %c0_6] : memref<1x384xf32, #tpu.memory_space<vmem>>, vector<1x384xf32>
    %6 = vector.broadcast %5 : vector<1x384xf32> to vector<8x384xf32>
    %7 = arith.addf %4, %6 : vector<8x384xf32>
    %8 = arith.truncf %2 : vector<8x128xf32> to vector<8x128xbf16>
    %c0_7 = arith.constant 0 : index
    %c0_8 = arith.constant 0 : index
    %9 = vector.load %arg4[%c0_7, %c0_8] : memref<128x384xbf16, #tpu.memory_space<vmem>>, vector<128x384xbf16>
    %cst_9 = arith.constant dense<0.000000e+00> : vector<8x384xf32>
    %10 = tpu.matmul %8, %9, %cst_9 {dimension_numbers = #tpu.dot_dimension_numbers<[1], [0], [0], [1], [0, 0, 1, 1], [], []>} : vector<8x128xbf16>, vector<128x384xbf16>, vector<8x384xf32> -> vector<8x384xf32>
    %11 = vector.extract_strided_slice %7 {offsets = [0, 0], sizes = [8, 128], strides = [1, 1]} : vector<8x384xf32> to vector<8x128xf32>
    %12 = vector.extract_strided_slice %10 {offsets = [0, 0], sizes = [8, 128], strides = [1, 1]} : vector<8x384xf32> to vector<8x128xf32>
    %13 = arith.addf %11, %12 : vector<8x128xf32>
    %14 = arith.negf %13 : vector<8x128xf32>
    %15 = math.exp %14 : vector<8x128xf32>
    %cst_10 = arith.constant 1.000000e+00 : f32
    %16 = vector.broadcast %cst_10 : f32 to vector<8x128xf32>
    %17 = arith.addf %16, %15 : vector<8x128xf32>
    %18 = arith.divf %16, %17 : vector<8x128xf32>
    %19 = vector.extract_strided_slice %7 {offsets = [0, 128], sizes = [8, 128], strides = [1, 1]} : vector<8x384xf32> to vector<8x128xf32>
    %20 = vector.extract_strided_slice %10 {offsets = [0, 128], sizes = [8, 128], strides = [1, 1]} : vector<8x384xf32> to vector<8x128xf32>
    %21 = arith.addf %19, %20 : vector<8x128xf32>
    %22 = arith.negf %21 : vector<8x128xf32>
    %23 = math.exp %22 : vector<8x128xf32>
    %cst_11 = arith.constant 1.000000e+00 : f32
    %24 = vector.broadcast %cst_11 : f32 to vector<8x128xf32>
    %25 = arith.addf %24, %23 : vector<8x128xf32>
    %26 = arith.divf %24, %25 : vector<8x128xf32>
    %27 = vector.extract_strided_slice %7 {offsets = [0, 256], sizes = [8, 128], strides = [1, 1]} : vector<8x384xf32> to vector<8x128xf32>
    %28 = vector.extract_strided_slice %10 {offsets = [0, 256], sizes = [8, 128], strides = [1, 1]} : vector<8x384xf32> to vector<8x128xf32>
    %c0_12 = arith.constant 0 : index
    %c0_13 = arith.constant 0 : index
    %29 = vector.load %arg6[%c0_12, %c0_13] : memref<1x128xf32, #tpu.memory_space<vmem>>, vector<1x128xf32>
    %30 = vector.broadcast %29 : vector<1x128xf32> to vector<8x128xf32>
    %31 = arith.addf %28, %30 : vector<8x128xf32>
    %32 = arith.mulf %18, %31 : vector<8x128xf32>
    %33 = arith.addf %27, %32 : vector<8x128xf32>
    %34 = math.tanh %33 : vector<8x128xf32>
    %cst_14 = arith.constant 1.000000e+00 : f32
    %35 = vector.broadcast %cst_14 : f32 to vector<8x128xf32>
    %36 = arith.subf %35, %26 : vector<8x128xf32>
    %37 = arith.mulf %36, %34 : vector<8x128xf32>
    %38 = arith.mulf %26, %2 : vector<8x128xf32>
    %39 = arith.addf %37, %38 : vector<8x128xf32>
    %c0_15 = arith.constant 0 : index
    %c0_16 = arith.constant 0 : index
    %40 = vector.load %arg10[%c0_15, %c0_16] : memref<8x128xf32, #tpu.memory_space<vmem>>, vector<8x128xf32>
    tpu.vector_store %arg10[%c0_15, %c0_16], %39 {strides = array<i32>} : memref<8x128xf32, #tpu.memory_space<vmem>>, vector<8x128xf32>,
    %c0_17 = arith.constant 0 : index
    %c0_18 = arith.constant 0 : index
    %41 = vector.load %arg2[%c0_17, %c0_18] : memref<8x128xf32, #tpu.memory_space<vmem>>, vector<8x128xf32>
    %42 = arith.truncf %41 : vector<8x128xf32> to vector<8x128xbf16>
    %c0_19 = arith.constant 0 : index
    %c0_20 = arith.constant 0 : index
    %43 = vector.load %arg7[%c0_19, %c0_20] : memref<128x128xbf16, #tpu.memory_space<vmem>>, vector<128x128xbf16>
    %cst_21 = arith.constant dense<0.000000e+00> : vector<8x128xf32>
    %44 = tpu.matmul %42, %43, %cst_21 {dimension_numbers = #tpu.dot_dimension_numbers<[1], [0], [0], [1], [0, 0, 1, 1], [], []>} : vector<8x128xbf16>, vector<128x128xbf16>, vector<8x128xf32> -> vector<8x128xf32>
    %45 = arith.truncf %39 : vector<8x128xf32> to vector<8x128xbf16>
    %c0_22 = arith.constant 0 : index
    %c0_23 = arith.constant 0 : index
    %46 = vector.load %arg8[%c0_22, %c0_23] : memref<128x128xbf16, #tpu.memory_space<vmem>>, vector<128x128xbf16>
    %cst_24 = arith.constant dense<0.000000e+00> : vector<8x128xf32>
    %47 = tpu.matmul %45, %46, %cst_24 {dimension_numbers = #tpu.dot_dimension_numbers<[1], [0], [0], [1], [0, 0, 1, 1], [], []>} : vector<8x128xbf16>, vector<128x128xbf16>, vector<8x128xf32> -> vector<8x128xf32>
    %48 = arith.addf %44, %47 : vector<8x128xf32>
    %c0_25 = arith.constant 0 : index
    %c0_26 = arith.constant 0 : index
    %49 = vector.load %arg9[%c0_25, %c0_26] : memref<1x128xf32, #tpu.memory_space<vmem>>, vector<1x128xf32>
    %50 = vector.broadcast %49 : vector<1x128xf32> to vector<8x128xf32>
    %51 = arith.addf %48, %50 : vector<8x128xf32>
    %52 = math.tanh %51 : vector<8x128xf32>
    %53 = arith.truncf %52 : vector<8x128xf32> to vector<8x128xbf16>
    %c0_27 = arith.constant 0 : index
    %c0_28 = arith.constant 0 : index
    %54 = vector.load %arg11[%c0_27, %c0_28] : memref<8x128xbf16, #tpu.memory_space<vmem>>, vector<8x128xbf16>
    tpu.vector_store %arg11[%c0_27, %c0_28], %53 {strides = array<i32>} : memref<8x128xbf16, #tpu.memory_space<vmem>>, vector<8x128xbf16>,
    return
  }
}

</mosaic_0001>

<bundles_post_ra>
// kernel: tpu_custom_call.1
= control target key start
LH: loop header
LB: loop body
LE: loop exit
PB: predicated region body
PF: predicated region fallthrough
CT: control target
= control target key end

     0   :  { %17 = vsyncpa [#allocation3], 0  ;;  %s1384_s0 = inlined_call_operand.hbm [shape: f32[8,64], index: 0, kind: input, shape index: {}]   ;;  %s1385_s1 = inlined_call_operand.hbm [shape: f32[8,128], index: 1, kind: input, shape index: {}]   ;;  %s1386_s2 = inlined_call_operand.hbm [shape: f32[8,128], index: 2, kind: input, shape index: {}]   ;;  %s1387_s3 = inlined_call_operand.hbm [shape: bf16[64,384], index: 3, kind: input, shape index: {}]   ;;  %s1388_s4 = inlined_call_operand.hbm [shape: bf16[128,384], index: 4, kind: input, shape index: {}]   ;;  %s1389_s5 = inlined_call_operand.vmem [shape: f32[1,384], index: 5, kind: input, shape index: {}]   ;;  %s1390_s6 = inlined_call_operand.vmem [shape: f32[1,128], index: 6, kind: input, shape index: {}]   ;;  %s1391_s7 = inlined_call_operand.hbm [shape: bf16[128,128], index: 7, kind: input, shape index: {}]   ;;  %s1392_s8 = inlined_call_operand.hbm [shape: bf16[128,128], index: 8, kind: input, shape index: {}]   ;;  %s1393_s9 = inlined_call_operand.vmem [shape: f32[1,128], index: 9, kind: input, shape index: {}]   ;;  %s1394_s10 = inlined_call_operand.hbm [shape: f32[8,128], index: 10, kind: output, shape index: {0}]   ;;  %s1395_s11 = inlined_call_operand.hbm [shape: bf16[8,128], index: 11, kind: output, shape index: {1}]  }
   0x1   :  { %18 = vsyncpa [#allocation6], 0 }
   0x2   :  { %19 = vsyncpa [#allocation9], 0 }
   0x3   :  { %20 = vsyncpa [#allocation12], 0 }
   0x4   :  { %21 = vsyncpa [#allocation4], 0  ;;  %s39_s19 = sshll.u32 %s1385_s1, 4  ;;  %s40_s19 = int_to_ptr.hbm [resolvable:$true] %s39_s19 }
   0x5   :  { %22 = vsyncpa [#allocation16], 0  ;;  %s1251_s20 = smov [#allocation5]   ;;  %s60_s24 = sshll.u32 %s1387_s3, 4  ;;  %s61_s24 = int_to_ptr.hbm [resolvable:$true] %s60_s24 }
   0x6   :  { %s41_s21 = sshll.u32 %s1251_s20, 4  ;;  %s1252_s25 = smov [#allocation8]   ;;  %s42_s21 = int_to_ptr.vmem [resolvable:$true] %s41_s21 }
   0x7   :  { %44 = dma.hbm_to_vmem [thread:$0]  %s40_s19, 128, %s42_s21, [#allocation6]  }
   0x8   :  { %s62_s26 = sshll.u32 %s1252_s25, 4  ;;  %s1253_s27 = smov 192   ;;  %s63_s26 = int_to_ptr.vmem [resolvable:$true] %s62_s26 }
   0x9   :  { %s1254_s28 = smov 12   ;;  %s90_s30 = sshll.u32 %s1391_s7, 4  ;;  %s91_s30 = int_to_ptr.hbm [resolvable:$true] %s90_s30 }
   0xa   :  { %68 = dma.hbm_to_vmem [thread:$0]  %s61_s24, 1536, %s63_s26, [#allocation9], %s1253_s27, %s1253_s27, %s1254_s28  }
   0xb   :  { %s1255_s12 = smov [#allocation11]   ;;  %s28_s15 = sshll.u32 %s1384_s0, 4  ;;  %s29_s15 = int_to_ptr.hbm [resolvable:$true] %s28_s15 }
   0xc   :  { %s92_s13 = sshll.u32 %s1255_s12, 4  ;;  %s1256_s16 = smov 64   ;;  %s93_s13 = int_to_ptr.vmem [resolvable:$true] %s92_s13 }
   0xd   :  { %s1257_s17 = smov 4   ;;  %s1258_s18 = smov [#allocation2]  }
   0xe   :  { %98 = dma.hbm_to_vmem [thread:$0]  %s91_s30, 1024, %s93_s13, [#allocation12], %s1256_s16, %s1256_s16, %s1257_s17  }
   0xf   :  { %s30_s19 = sshll.u32 %s1258_s18, 4  ;;  %s50_s22 = sshll.u32 %s1386_s2, 4  ;;  %s31_s19 = int_to_ptr.vmem [resolvable:$true] %s30_s19  ;;  %s51_s22 = int_to_ptr.hbm [resolvable:$true] %s50_s22 }
  0x10   :  { %33 = dma.hbm_to_vmem [thread:$0]  %s29_s15, 128, %s31_s19, [#allocation3]  }
  0x11   :  { %s73_s24 = sshll.u32 %s1388_s4, 4  ;;  %s1259_s25 = smov [#allocation7]   ;;  %s74_s24 = int_to_ptr.hbm [resolvable:$true] %s73_s24 }
  0x12   :  { %s52_s26 = sshll.u32 %s1259_s25, 4  ;;  %s1260_s0 = smov [#allocation10]   ;;  %s53_s26 = int_to_ptr.vmem [resolvable:$true] %s52_s26 }
  0x13   :  { %55 = dma.hbm_to_vmem [thread:$0]  %s51_s22, 128, %s53_s26, [#allocation6]  }
  0x14   :  { %s75_s1 = sshll.u32 %s1260_s0, 4  ;;  %s103_s12 = sshll.u32 %s1392_s8, 4  ;;  %s76_s1 = int_to_ptr.vmem [resolvable:$true] %s75_s1  ;;  %s104_s12 = int_to_ptr.hbm [resolvable:$true] %s103_s12 }
  0x15   :  { %81 = dma.hbm_to_vmem [thread:$0]  %s74_s24, 3072, %s76_s1, [#allocation9], %s1253_s27, %s1253_s27, %s1254_s28  }
  0x16   :  { %s1261_s2 = smov [#allocation13]  }
  0x17   :  { %s105_s13 = sshll.u32 %s1261_s2, 4  ;;  %s106_s13 = int_to_ptr.vmem [resolvable:$true] %s105_s13 }
  0x18   :  { %111 = dma.hbm_to_vmem [thread:$0]  %s104_s12, 1024, %s106_s13, [#allocation12], %s1256_s16, %s1256_s16, %s1257_s17  }
  0x19   :  { %1239 = dma.done.wait [#allocation3], 128  }
  0x1a   :  { %1240 = vsyncadd [#allocation3], 4294967168 }
  0x1b   :  { %1241 = dma.done.wait [#allocation6], 256  }
  0x1c   :  { %1242 = vsyncadd [#allocation6], 4294967040 }
  0x1d   :  { %1243 = dma.done.wait [#allocation9], 4608  }
  0x1e   :  { %1244 = vsyncadd [#allocation9], 4294962688 }
  0x1f   :  { %1245 = dma.done.wait [#allocation12], 2048  }
  0x20   :  { %1246 = vsyncadd [#allocation12], 4294965248  ;;  %v769_v0 = vld [vmem:[#allocation8 + $0x48] sm:$0xf]  ;;  %v954_v1 = vld [vmem:[#allocation8 + $0x50] sm:$0xf0] }
  0x21   :  { %v868_v2 = vld [vmem:[#allocation10 + $0xa8] sm:$0xf]  ;;  %v770_v3 = vor.u32 %v954_v1, %v769_v0  ;;  %v978_v4 = vld [vmem:[#allocation10 + $0xb0] sm:$0xf0]  ;;  %v757_v5 = vld [vmem:[#allocation8 + $0x30] sm:$0xf] }
  0x22   :  { %v951_v6 = vld [vmem:[#allocation8 + $0x38] sm:$0xf0]  ;;  %v869_v7 = vor.u32 %v978_v4, %v868_v2  ;;  %v856_v8 = vld [vmem:[#allocation10 + $0x90] sm:$0xf]  ;;  %v745_v12 = vld [vmem:[#allocation8 + $0x18] sm:$0xf] }
  0x23   :  { %v975_v9 = vld [vmem:[#allocation10 + $0x98] sm:$0xf0]  ;;  %242 = vmatpush.bf16.msra.mxu0 %v770_v3  ;;  %v758_v10 = vor.u32 %v951_v6, %v757_v5  ;;  %v948_v13 = vld [vmem:[#allocation8 + $0x20] sm:$0xf0]  ;;  %v844_v14 = vld [vmem:[#allocation10 + $0x78] sm:$0xf] }
  0x24   :  { %438 = vmatpush.bf16.msra.mxu3 %v869_v7  ;;  %v857_v11 = vor.u32 %v975_v9, %v856_v8  ;;  %v972_v15 = vld [vmem:[#allocation10 + $0x80] sm:$0xf0]  ;;  %v953_v16 = vld [vmem:[#allocation8 + $0x4c] sm:$0xf]  ;;  %v771_v17 = vld [vmem:[#allocation8 + $0x54] sm:$0xf0]  ;;  %v746_v19 = vor.u32 %v948_v13, %v745_v12 }
  0x25   :  { %v774_v18 = vor.u32 %v953_v16, %v771_v17  ;;  %v950_v20 = vld [vmem:[#allocation8 + $0x34] sm:$0xf]  ;;  %v759_v21 = vld [vmem:[#allocation8 + $0x3c] sm:$0xf0]  ;;  %v845_v22 = vor.u32 %v972_v15, %v844_v14  ;;  %v945_v24 = vld [vmem:[#allocation8 + $0x8] sm:$0xf0] }
  0x26   :  { %v733_v23 = vld [vmem:[#allocation8] sm:$0xf]  ;;  %v762_v26 = vor.u32 %v950_v20, %v759_v21  ;;  %v969_v27 = vld [vmem:[#allocation10 + $0x68] sm:$0xf0]  ;;  %v870_v29 = vld [vmem:[#allocation10 + $0xb4] sm:$0xf0] }
  0x27   :  { %243 = vmatpush.bf16.msra.mxu0 %v758_v10  ;;  %v832_v25 = vld [vmem:[#allocation10 + $0x60] sm:$0xf]  ;;  %255 = vmatpush.bf16.msra.mxu1 %v774_v18  ;;  %v977_v28 = vld [vmem:[#allocation10 + $0xac] sm:$0xf]  ;;  %v947_v30 = vld [vmem:[#allocation8 + $0x1c] sm:$0xf]  ;;  %v734_v32 = vor.u32 %v945_v24, %v733_v23 }
  0x28   :  { %439 = vmatpush.bf16.msra.mxu3 %v857_v11  ;;  %v747_v31 = vld [vmem:[#allocation8 + $0x24] sm:$0xf0]  ;;  %v833_v34 = vor.u32 %v969_v27, %v832_v25  ;;  %v873_v35 = vor.u32 %v977_v28, %v870_v29  ;;  %v966_v37 = vld [vmem:[#allocation10 + $0x50] sm:$0xf0]  ;;  %v858_v39 = vld [vmem:[#allocation10 + $0x9c] sm:$0xf0] }
  0x29   :  { %v143_v33 = vld [vmem:[#allocation2] sm:$0xff]  ;;  %v974_v38 = vld [vmem:[#allocation10 + $0x94] sm:$0xf]  ;;  %v750_v40 = vor.u32 %v947_v30, %v747_v31  ;;  %v944_v42 = vld [vmem:[#allocation8 + $0x4] sm:$0xf]  ;;  %vm234_vm0 = vcmask 523264  }
  0x2a   :  { %v820_v36 = vld [vmem:[#allocation10 + $0x48] sm:$0xf]  ;;  %v1351_v41 = vpack.c.bf16 %v143_v33, %v143_v33  ;;  %v735_v43 = vld [vmem:[#allocation8 + $0xc] sm:$0xf0]  ;;  %v979_v45 = vld [vmem:[#allocation10 + $0xb8] sm:$0xf0]  ;;  %v861_v47 = vor.u32 %v974_v38, %v858_v39 }
  0x2b   :  { %244 = vmatpush.bf16.msra.mxu0 %v746_v19  ;;  %256 = vmatpush.bf16.msra.mxu1 %v762_v26  ;;  %v876_v44 = vld [vmem:[#allocation10 + $0xb0] sm:$0xf]  ;;  %v821_v46 = vor.u32 %v966_v37, %v820_v36  ;;  %v963_v49 = vld [vmem:[#allocation10 + $0x38] sm:$0xf0]  ;;  %v846_v51 = vld [vmem:[#allocation10 + $0x84] sm:$0xf0]  ;;  %v738_v52 = vor.u32 %v944_v42, %v735_v43 }
  0x2c   :  { %440 = vmatpush.bf16.msra.mxu3 %v845_v22  ;;  %v808_v48 = vld [vmem:[#allocation10 + $0x30] sm:$0xf]  ;;  %v971_v50 = vld [vmem:[#allocation10 + $0x7c] sm:$0xf]  ;;  %v877_v53 = vor.u32 %v979_v45, %v876_v44  ;;  %v864_v56 = vld [vmem:[#allocation10 + $0x98] sm:$0xf] }
  0x2d   :  { %v777_v54 = vld [vmem:[#allocation8 + $0x50] sm:$0xf]  ;;  %v955_v55 = vld [vmem:[#allocation8 + $0x58] sm:$0xf0]  ;;  %v976_v57 = vld [vmem:[#allocation10 + $0xa0] sm:$0xf0]  ;;  %v809_v59 = vor.u32 %v963_v49, %v808_v48  ;;  %v849_v60 = vor.u32 %v971_v50, %v846_v51 }
  0x2e   :  { %v778_v58 = vor.u32 %v955_v55, %v777_v54  ;;  %v796_v61 = vld [vmem:[#allocation10 + $0x18] sm:$0xf]  ;;  %v952_v63 = vld [vmem:[#allocation8 + $0x40] sm:$0xf0]  ;;  %v834_v2 = vld [vmem:[#allocation10 + $0x6c] sm:$0xf0]  ;;  %v865_v4 = vor.u32 %v976_v57, %v864_v56 }
  0x2f   :  { %245 = vmatpush.bf16.msra.mxu0 %v734_v32  ;;  %257 = vmatpush.bf16.msra.mxu1 %v750_v40  ;;  %v765_v62 = vld [vmem:[#allocation8 + $0x38] sm:$0xf]  ;;  %v960_v0 = vld [vmem:[#allocation10 + $0x20] sm:$0xf0]  ;;  %v753_v5 = vld [vmem:[#allocation8 + $0x20] sm:$0xf] }
  0x30   :  { %441 = vmatpush.bf16.msra.mxu3 %v833_v34  ;;  %v968_v1 = vld [vmem:[#allocation10 + $0x64] sm:$0xf]  ;;  %268 = vmatpush.bf16.msra.mxu2 %v778_v58  ;;  %v766_v3 = vor.u32 %v952_v63, %v765_v62  ;;  %v949_v6 = vld [vmem:[#allocation8 + $0x28] sm:$0xf0]  ;;  %v852_v7 = vld [vmem:[#allocation10 + $0x80] sm:$0xf]  ;;  %v797_v9 = vor.u32 %v960_v0, %v796_v61 }
  0x31   :  { %v973_v8 = vld [vmem:[#allocation10 + $0x88] sm:$0xf0]  ;;  %v837_v10 = vor.u32 %v968_v1, %v834_v2  ;;  %v784_v11 = vld [vmem:[#allocation10] sm:$0xf]  ;;  %v822_v14 = vld [vmem:[#allocation10 + $0x54] sm:$0xf0]  ;;  %v754_v15 = vor.u32 %v949_v6, %v753_v5 }
  0x32   :  { %779 = vmatmul.msk.bf16.vlgmr.msra.gmra.mxu0 %vm234_vm0, %v1351_v41  ;;  %v957_v12 = vld [vmem:[#allocation10 + $0x8] sm:$0xf0]  ;;  %v853_v16 = vor.u32 %v973_v8, %v852_v7  ;;  %v741_v17 = vld [vmem:[#allocation8 + $0x8] sm:$0xf]  ;;  %v946_v18 = vld [vmem:[#allocation8 + $0x10] sm:$0xf0] }
  0x33   :  { %451 = vmatpush.bf16.msrb.mxu0 %v873_v35  ;;  %258 = vmatpush.bf16.msra.mxu1 %v738_v52  ;;  %v965_v13 = vld [vmem:[#allocation10 + $0x4c] sm:$0xf]  ;;  %v840_v19 = vld [vmem:[#allocation10 + $0x68] sm:$0xf]  ;;  %v970_v20 = vld [vmem:[#allocation10 + $0x70] sm:$0xf0]  ;;  %v785_v21 = vor.u32 %v957_v12, %v784_v11  ;;  %v742_v26 = vor.u32 %v946_v18, %v741_v17 }
  0x34   :  { %442 = vmatpush.bf16.msra.mxu3 %v821_v46  ;;  %269 = vmatpush.bf16.msra.mxu2 %v766_v3  ;;  %v825_v22 = vor.u32 %v965_v13, %v822_v14  ;;  %v1357_v23 = vld [vmem:[#allocation5] sm:$0xff]  ;;  %v810_v25 = vld [vmem:[#allocation10 + $0x3c] sm:$0xf0]  ;;  %v841_v27 = vor.u32 %v970_v20, %v840_v19  ;;  %v967_v30 = vld [vmem:[#allocation10 + $0x58] sm:$0xf0]  ;;  %s702_s15 = sshll.u32 %s1394_s10, 4  ;;  %s703_s15 = int_to_ptr.hbm [resolvable:$true] %s702_s15 }
  0x35   :  { %v962_v24 = vld [vmem:[#allocation10 + $0x34] sm:$0xf]  ;;  %v277_v28 = vpack.c.bf16 %v1357_v23, %v1357_v23  ;;  %v828_v29 = vld [vmem:[#allocation10 + $0x50] sm:$0xf]  ;;  %v959_v32 = vld [vmem:[#allocation10 + $0x1c] sm:$0xf] }
  0x36   :  { %780 = vmatmul.msk.bf16.vlgmr.msra.gmra.mxu1 %vm234_vm0, %v1351_v41  ;;  %v813_v31 = vor.u32 %v962_v24, %v810_v25  ;;  %v798_v33 = vld [vmem:[#allocation10 + $0x24] sm:$0xf0]  ;;  %v829_v34 = vor.u32 %v967_v30, %v828_v29  ;;  %v816_v35 = vld [vmem:[#allocation10 + $0x38] sm:$0xf]  ;;  %v964_v36 = vld [vmem:[#allocation10 + $0x40] sm:$0xf0] }
  0x37   :  { %452 = vmatpush.bf16.msrb.mxu0 %v861_v47  ;;  %464 = vmatpush.bf16.msrb.mxu1 %v877_v53  ;;  %v801_v37 = vor.u32 %v959_v32, %v798_v33  ;;  %v956_v38 = vld [vmem:[#allocation10 + $0x4] sm:$0xf]  ;;  %v786_v39 = vld [vmem:[#allocation10 + $0xc] sm:$0xf0]  ;;  %v817_v40 = vor.u32 %v964_v36, %v816_v35  ;;  %v804_v42 = vld [vmem:[#allocation10 + $0x20] sm:$0xf] }
  0x38   :  { %443 = vmatpush.bf16.msra.mxu3 %v809_v59  ;;  %270 = vmatpush.bf16.msra.mxu2 %v754_v15  ;;  %v961_v43 = vld [vmem:[#allocation10 + $0x28] sm:$0xf0]  ;;  %v789_v44 = vor.u32 %v956_v38, %v786_v39  ;;  %v792_v46 = vld [vmem:[#allocation10 + $0x8] sm:$0xf]  ;;  %v958_v47 = vld [vmem:[#allocation10 + $0x10] sm:$0xf0] }
  0x39   :  { %v805_v45 = vor.u32 %v961_v43, %v804_v42  ;;  %v793_v48 = vor.u32 %v958_v47, %v792_v46  ;;  %v987_v49 = vld [vmem:[#allocation11 + $0x38] sm:$0xff]  ;;  %v986_v50 = vld [vmem:[#allocation11 + $0x30] sm:$0xff]  ;;  %v985_v52 = vld [vmem:[#allocation11 + $0x28] sm:$0xff]  ;;  %s1263_s18 = smov [#allocation15]   ;;  %s713_s10 = sshll.u32 %s1395_s11, 4  ;;  %s714_s10 = int_to_ptr.hbm [resolvable:$true] %s713_s10 }
  0x3a   :  { %v995_v51 = vld [vmem:[#allocation13 + $0x38] sm:$0xff]  ;;  %v994_v55 = vld [vmem:[#allocation13 + $0x30] sm:$0xff]  ;;  %v984_v56 = vld [vmem:[#allocation11 + $0x20] sm:$0xff]  ;;  %s711_s19 = sshll.u32 %s1263_s18, 4  ;;  %s712_s19 = int_to_ptr.vmem [resolvable:$true] %s711_s19 }
  0x3b   :  { %453 = vmatpush.bf16.msrb.mxu0 %v849_v60  ;;  %465 = vmatpush.bf16.msrb.mxu1 %v865_v4  ;;  %v993_v57 = vld [vmem:[#allocation13 + $0x28] sm:$0xff]  ;;  %v983_v58 = vld [vmem:[#allocation11 + $0x18] sm:$0xff]  ;;  %v992_v62 = vld [vmem:[#allocation13 + $0x20] sm:$0xff] }
  0x3c   :  { %444 = vmatpush.bf16.msra.mxu3 %v797_v9  ;;  %271 = vmatpush.bf16.msra.mxu2 %v742_v26  ;;  %v1366_v59 = vld [vmem:[%s1389_s5] sm:$0x7]  ;;  %v982_v63 = vld [vmem:[#allocation11 + $0x10] sm:$0xff]  ;;  %v991_v2 = vld [vmem:[#allocation13 + $0x18] sm:$0xff] }
  0x3d   :  { %v164_v61 = vperm.slane %v1366_v59, 0  ;;  %v165_v1 = vperm.slane %v1366_v59, 1  ;;  %v981_v3 = vld [vmem:[#allocation11 + $0x8] sm:$0xff]  ;;  %v990_v9 = vld [vmem:[#allocation13 + $0x10] sm:$0xff]  ;;  %v530_v11 = vld [vmem:[#allocation7] sm:$0xff]  ;;  %v166_v35 = vperm.slane %v1366_v59, 2 }
  0x3e   :  { %v531_v12 = vpack.c.bf16 %v530_v11, %v530_v11  ;;  %v989_v13 = vld [vmem:[#allocation13 + $0x8] sm:$0xff]  ;;  %v988_v19 = vld [vmem:[#allocation13] sm:$0xff] }
  0x3f   :  { %454 = vmatpush.bf16.msrb.mxu0 %v837_v10  ;;  %466 = vmatpush.bf16.msrb.mxu1 %v853_v16  ;;  %v980_v10 = vld [vmem:[#allocation11] sm:$0xff] }
  0x40   :  { %445 = vmatpush.bf16.msra.mxu3 %v785_v21  ;;  %781 = vmatmul.msk.bf16.vlgmr.msra.gmra.mxu2 %vm234_vm0, %v1351_v41 }
  0x41   :  { %613 = vmatpush.bf16.msrb.mxu2 %v995_v51 }
  0x43   :  { %455 = vmatpush.bf16.msrb.mxu0 %v825_v22  ;;  %467 = vmatpush.bf16.msrb.mxu1 %v841_v27 }
  0x44   :  { %446 = vmatmul.bf16.vlgmr.msra.gmra.mxu3 %v277_v28 }
  0x45   :  { %674 = vmatpush.bf16.msrb.mxu3 %v987_v49  ;;  %614 = vmatpush.bf16.msrb.mxu2 %v994_v55 }
  0x47   :  { %456 = vmatpush.bf16.msrb.mxu0 %v813_v31  ;;  %468 = vmatpush.bf16.msrb.mxu1 %v829_v34  ;;  %v1009_v31 = vld [vmem:[%s1390_s6] ss:$0 sm:$0xff]  ;;  %s1262_s6 = smov [#allocation14]  }
  0x48   :  { %s700_s28 = sshll.u32 %s1262_s6, 4  ;;  %s701_s28 = int_to_ptr.vmem [resolvable:$true] %s700_s28 }
  0x49   :  { %675 = vmatpush.bf16.msrb.mxu3 %v986_v50  ;;  %615 = vmatpush.bf16.msrb.mxu2 %v993_v57 }
  0x4b   :  { %457 = vmatpush.bf16.msrb.mxu0 %v801_v37  ;;  %469 = vmatpush.bf16.msrb.mxu1 %v817_v40 }
  0x4d   :  { %676 = vmatpush.bf16.msrb.mxu3 %v985_v52  ;;  %616 = vmatpush.bf16.msrb.mxu2 %v992_v62  ;;  %v1010_v62 = vld [vmem:[%s1393_s9] ss:$0 sm:$0xff] }
  0x4f   :  { %458 = vmatpush.bf16.msrb.mxu0 %v789_v44  ;;  %470 = vmatpush.bf16.msrb.mxu1 %v805_v45 }
  0x51   :  { %677 = vmatpush.bf16.msrb.mxu3 %v984_v56  ;;  %617 = vmatpush.bf16.msrb.mxu2 %v991_v2 }
  0x52   :  { %459 = vmatmul.bf16.vlgmr.msrb.gmra.mxu0 %v277_v28 }
  0x53   :  { %471 = vmatpush.bf16.msrb.mxu1 %v793_v48 }
  0x55   :  { %678 = vmatpush.bf16.msrb.mxu3 %v983_v58  ;;  %618 = vmatpush.bf16.msrb.mxu2 %v990_v9 }
  0x56   :  { %472 = vmatmul.bf16.vlgmr.msrb.gmra.mxu1 %v277_v28 }
  0x59   :  { %679 = vmatpush.bf16.msrb.mxu3 %v982_v63  ;;  %619 = vmatpush.bf16.msrb.mxu2 %v989_v13 }
  0x5d   :  { %680 = vmatpush.bf16.msrb.mxu3 %v981_v3  ;;  %620 = vmatpush.bf16.msrb.mxu2 %v988_v19 }
  0x61   :  { %681 = vmatpush.bf16.msrb.mxu3 %v980_v10 }
  0x64   :  { %682 = vmatmul.bf16.vlgmr.msrb.gmra.mxu3 %v531_v12 }
  0xaf   :  { %v247_v41 = vpop.f32.mrf.mxu0 }
  0xb0   :  { %v248_v0 = vadd.f32 %v247_v41, %v164_v61 }
  0xb3   :  { %v260_v53 = vpop.f32.mrf.mxu1 }
  0xb4   :  { %v261_v7 = vadd.f32 %v260_v53, %v165_v1 }
  0xb7   :  { %v249_v54 = vpop.f32.mrf.mxu0 }
  0xbb   :  { %v262_v60 = vpop.f32.mrf.mxu1 }
  0xc3   :  { %v273_v6 = vpop.f32.mrf.mxu2 }
  0xc4   :  { %v274_v44 = vadd.f32 %v273_v6, %v166_v35 }
  0xc7   :  { %v447_v4 = vpop.f32.mrf.mxu3 }
  0xc8   :  { %v477_v5 = vadd.f32 %v447_v4, %v248_v0 }
  0xca   :  { %v878_v8 = vmul.f32 -1.442695, %v477_v5 }
  0xcb   :  { %v275_v18 = vpop.f32.mrf.mxu2 }
  0xcc   :  { %1011 = vpow2.f32 %v878_v8 }
  0xcf   :  { %v460_v14 = vpop.f32.mrf.mxu0  ;;  %v449_v16 = vpop.f32.mrf.mxu3 }
  0xd0   :  { %v497_v15 = vadd.f32 %v460_v14, %v261_v7 }
  0xd2   :  { %v879_v17 = vmul.f32 -1.442695, %v497_v15  ;;  %v1012_v20 = vpop.eup %1011 }
  0xd3   :  { %v481_v21 = vadd.f32 1.0, %v1012_v20  ;;  %v473_v22 = vpop.f32.mrf.mxu1 }
  0xd4   :  { %1013 = vpow2.f32 %v879_v17  ;;  %v521_v39 = vadd.f32 %v1009_v31, %v473_v22 }
  0xd5   :  { %1015 = vrcp.f32 %v481_v21  ;;  %v493_v32 = vand.u32 2147483648, %v481_v21  ;;  %v491_v34 = vand.u32 2147483647, %v481_v21  ;;  %vm487_vm2 = vweird.f32 %v481_v21 }
  0xd7   :  { %v462_v24 = vpop.f32.mrf.mxu0  ;;  %v494_v40 = vor.u32 1.1754944e-38, %v493_v32  ;;  %vm492_vm4 = vcmp.eq.f32.partialorder %v491_v34, 8.507059e+37 }
  0xda   :  { %v1014_v25 = vpop.eup %1013 }
  0xdb   :  { %v501_v26 = vadd.f32 1.0, %v1014_v25  ;;  %v1016_v27 = vpop.eup %1015  ;;  %v475_v28 = vpop.f32.mrf.mxu1 }
  0xdc   :  { %v483_v29 = vmul.f32 %v1016_v27, %v481_v21  ;;  %vm488_vm1 = vweird.f32 %v1016_v27 }
  0xdd   :  { %1017 = vrcp.f32 %v501_v26  ;;  %vm489_vm3 = vmor %vm487_vm2, %vm488_vm1  ;;  %v513_v48 = vand.u32 2147483648, %v501_v26  ;;  %v511_v49 = vand.u32 2147483647, %v501_v26  ;;  %vm507_vm6 = vweird.f32 %v501_v26 }
  0xde   :  { %v484_v30 = vsub.f32 1.0, %v483_v29 }
  0xdf   :  { %v514_v52 = vor.u32 1.1754944e-38, %v513_v48  ;;  %vm512_vm8 = vcmp.eq.f32.partialorder %v511_v49, 8.507059e+37 }
  0xe0   :  { %v485_v33 = vmul.f32 %v1016_v27, %v484_v30 }
  0xe2   :  { %v486_v38 = vadd.f32 %v1016_v27, %v485_v33 }
  0xe3   :  { %v1018_v36 = vpop.eup %1017 }
  0xe4   :  { %v503_v37 = vmul.f32 %v1018_v36, %v501_v26  ;;  %v490_v43 = vsel %vm489_vm3, %v1016_v27, %v486_v38  ;;  %vm508_vm5 = vweird.f32 %v1018_v36 }
  0xe5   :  { %v495_v45 = vsel %vm492_vm4, %v494_v40, %v490_v43  ;;  %vm509_vm7 = vmor %vm507_vm6, %vm508_vm5 }
  0xe6   :  { %v504_v42 = vsub.f32 1.0, %v503_v37  ;;  %v522_v46 = vmul.f32 %v521_v39, %v495_v45 }
  0xe7   :  { %v683_v60 = vpop.f32.mrf.mxu3 }
  0xe8   :  { %v505_v47 = vmul.f32 %v1018_v36, %v504_v42  ;;  %v523_v41 = vadd.f32 %v522_v46, %v274_v44 }
  0xea   :  { %v506_v50 = vadd.f32 %v1018_v36, %v505_v47  ;;  %1019 = vtanh.f32 %v523_v41 }
  0xec   :  { %v510_v51 = vsel %vm509_vm7, %v1018_v36, %v506_v50 }
  0xed   :  { %v515_v53 = vsel %vm512_vm8, %v514_v52, %v510_v51 }
  0xee   :  { %v525_v54 = vsub.f32 1.0, %v515_v53  ;;  %v527_v57 = vmul.f32 %v515_v53, %v1357_v23 }
  0xef   :  { %v685_v61 = vpop.f32.mrf.mxu3 }
  0xf0   :  { %v1020_v55 = vpop.eup %1019 }
  0xf1   :  { %v526_v56 = vmul.f32 %v1020_v55, %v525_v54 }
  0xf3   :  { %v528_v58 = vadd.f32 %v527_v57, %v526_v56 }
  0xf5   :  { %v548_v59 = vpack.c.bf16 %v528_v58, %v528_v58  ;;  %529 = vst [vmem:[#allocation14] sm:$0xff] %v528_v58 }
  0xf6   :  { %705 = dma.vmem_to_hbm [thread:$0]  %s701_s28, 128, %s703_s15, [#allocation4]  }
  0xf7   :  { %621 = vmatmul.bf16.vlgmr.msrb.gmra.mxu2 %v548_v59 }
 0x17a   :  { %v622_v23 = vpop.f32.mrf.mxu2 }
 0x17b   :  { %v684_v63 = vadd.f32 %v683_v60, %v622_v23 }
 0x17d   :  { %v691_v0 = vadd.f32 %v1010_v62, %v684_v63 }
 0x17f   :  { %1021 = vtanh.f32 %v691_v0 }
 0x182   :  { %v624_v1 = vpop.f32.mrf.mxu2 }
 0x185   :  { %v1022_v2 = vpop.eup %1021 }
 0x186   :  { %v693_v3 = vpack.c.bf16 %v1022_v2, %v1022_v2 }
 0x188   :  { %694 = vst [vmem:[#allocation15] sm:$0xf] %v693_v3 }
 0x189   :  { %716 = dma.vmem_to_hbm [thread:$0]  %s712_s19, 64, %s714_s10, [#allocation16]  }
 0x18a   :  { %1247 = dma.done.wait [#allocation4], 128  }
 0x18b   :  { %1248 = vsyncadd [#allocation4], 4294967168 }
 0x18c   :  { %1249 = dma.done.wait [#allocation16], 64  }
 0x18d   :  { %1250 = vsyncadd [#allocation16], 4294967232 }
 0x18e   :  { %725 = vsyncpa [#allocation3], 1 }
 0x18f   :  { %726 = vsyncpa [#allocation6], 1 }
 0x190   :  { %727 = vsyncpa [#allocation9], 1 }
 0x191   :  { %728 = vsyncpa [#allocation12], 1 }
 0x192   :  { %729 = vsyncpa [#allocation4], 1 }
 0x193   :  { %730 = vsyncpa [#allocation16], 1 }

</bundles_post_ra>
